<compile_context>
chip_gen: v6e
topology: v6e:2x2x1
jax: 0.10.0
libtpu: 0.0.40
codegen_flags: <defaults>
</compile_context>

<pallas_src>
import functools

import jax
import jax.numpy as jnp
from jax.experimental import pallas as pl
from jax.experimental.pallas import tpu as pltpu

ALPHA = 1.0
GAMMA = 2.0   # kernel hardcodes the gamma=2 default via an explicit square


def _focal_loss_kernel(logits_ref, targets_ref, out_ref, acc_ref,
                       *, total_n, tile_n, inv_n):
    i = pl.program_id(0)

    @pl.when(i == 0)
    def _init():
        acc_ref[...] = jnp.zeros_like(acc_ref)

    logits = logits_ref[...].astype(jnp.float32)        # (tile_n, C)
    tgt = targets_ref[...]                              # (tile_n, 1) int32
    tn, c = logits.shape

    # Numerically-stable softmax pieces (single big EUP exp over the tile).
    row_max = jnp.max(logits, axis=-1, keepdims=True)                  # (tile_n, 1)
    e = jnp.exp(logits - row_max)                                      # (tile_n, C)
    sum_e = jnp.sum(e, axis=-1, keepdims=True)                         # (tile_n, 1)

    # Gather logits[i, t_i] and exp(logits[i, t_i] - max_i) with a one-hot
    # mask (no dynamic gather on TPU).
    col_ids = jax.lax.broadcasted_iota(jnp.int32, (tn, c), dimension=1)
    onehot = col_ids == tgt                                            # (tile_n, C)
    tgt_logit = jnp.sum(jnp.where(onehot, logits, 0.0), axis=-1, keepdims=True)
    tgt_e = jnp.sum(jnp.where(onehot, e, 0.0), axis=-1, keepdims=True)

    # Per-sample cross entropy (reduction='none').
    ce = (row_max + jnp.log(sum_e)) - tgt_logit                        # (tile_n, 1)

    # prob = exp(-ce) = exp(tgt_logit - lse) = tgt_e / sum_e, reusing `e`
    # instead of a second exp.  (approx=True would use the near-free EUP vrcp
    # at lower accuracy; exact reciprocal keeps full f32 fidelity here.)
    prob = tgt_e * pl.reciprocal(sum_e, approx=False)

    # Focal re-weighting; gamma == 2 -> explicit square (no pow on the EUP).
    pm1 = 1.0 - prob
    focal = ALPHA * pm1 * pm1 * ce                                     # (tile_n, 1)

    # Mask out rows that only exist because of padding to a tile multiple.
    row_ids = jax.lax.broadcasted_iota(jnp.int32, (tn, 1), dimension=0)
    valid = (row_ids + i * tile_n) < total_n
    focal = jnp.where(valid, focal, 0.0)

    acc_ref[...] = acc_ref[...] + jnp.sum(focal, axis=0, keepdims=True)

    @pl.when(i == pl.num_programs(0) - 1)
    def _finalize():
        # reduction='mean' over the *global* batch size.
        out_ref[...] = acc_ref[...] * inv_n


def focal_loss(logits: jax.Array, targets: jax.Array, *, tile_n: int = 512) -> jax.Array:
    """logits: (N, C) float (f32/bf16); targets: (N,) int. Scalar f32 mean focal loss."""
    n, c = logits.shape
    tgt = targets.astype(jnp.int32).reshape(n, 1)

    # Row tile: multiple of 8 (sublane), no bigger than the (8-padded) batch.
    # The default keeps the two double-buffered (tile_n, C) logit blocks well
    # under the scoped-VMEM limits on v5e (16 MiB default) and v7x (64 MiB).
    n8 = ((n + 7) // 8) * 8
    tile_n = max(8, min((tile_n // 8) * 8, n8))
    padded_n = ((n + tile_n - 1) // tile_n) * tile_n
    if padded_n != n:
        logits = jnp.pad(logits, ((0, padded_n - n), (0, 0)))
        tgt = jnp.pad(tgt, ((0, padded_n - n), (0, 0)))
    grid = padded_n // tile_n

    kernel = functools.partial(
        _focal_loss_kernel, total_n=n, tile_n=tile_n, inv_n=1.0 / n)

    out = pl.pallas_call(
        kernel,
        out_shape=jax.ShapeDtypeStruct((1, 1), jnp.float32),
        grid=(grid,),
        in_specs=[
            pl.BlockSpec((tile_n, c), lambda i: (i, 0)),   # logits, native dtype
            pl.BlockSpec((tile_n, 1), lambda i: (i, 0)),   # targets
        ],
        out_specs=pl.BlockSpec((1, 1), lambda i: (0, 0)),  # resident; single writeback
        scratch_shapes=[pltpu.VMEM((1, 1), jnp.float32)],  # running focal sum
        compiler_params=pltpu.CompilerParams(
            dimension_semantics=("arbitrary",)),           # sequential accumulator axis
    )(logits, tgt)
    return out[0, 0]


def _focal_loss_ref(logits, targets):
    """Pure-JAX reference mirroring the PyTorch module."""
    logp = jax.nn.log_softmax(logits.astype(jnp.float32), axis=-1)
    ce = -jnp.take_along_axis(logp, targets[:, None].astype(jnp.int32), axis=-1)[:, 0]
    prob = jnp.exp(-ce)
    return jnp.mean(ALPHA * (1.0 - prob) ** GAMMA * ce)


if __name__ == "__main__":
    key = jax.random.PRNGKey(0)
    k1, k2, k3, k4 = jax.random.split(key, 4)

    # Case 1: tiny single-tile problem (batch=8, classes=32), f32 logits.
    logits_a = jax.random.normal(k1, (8, 32), dtype=jnp.float32) * 2.0
    targets_a = jax.random.randint(k2, (8,), minval=0, maxval=32, dtype=jnp.int32)
    out_a = jax.block_until_ready(focal_loss(logits_a, targets_a))
    ref_a = _focal_loss_ref(logits_a, targets_a)
    assert jnp.allclose(out_a, ref_a, atol=1e-5, rtol=1e-4), (out_a, ref_a)

    # Case 2: multi-tile grid with a masked remainder (batch=300, classes=64),
    # bf16 logits fed natively (halves HBM traffic; cast to f32 in-kernel).
    logits_b = (jax.random.normal(k3, (300, 64), dtype=jnp.float32) * 2.0
                ).astype(jnp.bfloat16)
    targets_b = jax.random.randint(k4, (300,), minval=0, maxval=64, dtype=jnp.int32)
    out_b = jax.block_until_ready(focal_loss(logits_b, targets_b, tile_n=128))
    ref_b = _focal_loss_ref(logits_b.astype(jnp.float32), targets_b)
    assert jnp.allclose(out_b, ref_b, atol=1e-5, rtol=1e-4), (out_b, ref_b)

    print("KERNEL_OK")
</pallas_src>

<mosaic_0001>
module attributes {stable_mosaic.version = 11 : i64} {
  func.func @_focal_loss_kernel(%arg0: i32, %arg1: memref<8x32xf32, #tpu.memory_space<vmem>>, %arg2: memref<8x1xi32, #tpu.memory_space<vmem>>, %arg3: memref<1x1xf32, #tpu.memory_space<vmem>>, %arg4: memref<1x1xf32, #tpu.memory_space<vmem>>) attributes {dimension_semantics = [#tpu.dimension_semantics<arbitrary>], iteration_bounds = array<i64: 1>, scalar_prefetch = 0 : i64, scratch_operands = 1 : i64, tpu.core_type = #tpu.core_type<tc>, window_params = [{transform_indices = @transform_0, window_bounds = array<i64: 8, 32>}, {transform_indices = @transform_1, window_bounds = array<i64: 8, 1>}, {pipeline_mode = #tpu.pipeline_mode<synchronous>, transform_indices = @transform_2, window_bounds = array<i64: 1, 1>}]} {
    %c0_i32 = arith.constant 0 : i32
    %0 = arith.cmpi eq, %arg0, %c0_i32 : i32
    %1 = arith.extui %0 : i1 to i32
    %c0_i32_0 = arith.constant 0 : i32
    %2 = arith.cmpi ne, %1, %c0_i32_0 : i32
    scf.if %2 {
      %cst_20 = arith.constant 0.000000e+00 : f32
      %50 = vector.broadcast %cst_20 : f32 to vector<1x1xf32>
      %c0_21 = arith.constant 0 : index
      %c0_22 = arith.constant 0 : index
      %51 = vector.load %arg4[%c0_21, %c0_22] : memref<1x1xf32, #tpu.memory_space<vmem>>, vector<1x1xf32>
      tpu.vector_store %arg4[%c0_21, %c0_22], %50 {strides = array<i32>} : memref<1x1xf32, #tpu.memory_space<vmem>>, vector<1x1xf32>,
    } else {
    }
    %c0 = arith.constant 0 : index
    %c0_1 = arith.constant 0 : index
    %3 = vector.load %arg1[%c0, %c0_1] : memref<8x32xf32, #tpu.memory_space<vmem>>, vector<8x32xf32>
    %c0_2 = arith.constant 0 : index
    %c0_3 = arith.constant 0 : index
    %4 = vector.load %arg2[%c0_2, %c0_3] : memref<8x1xi32, #tpu.memory_space<vmem>>, vector<8x1xi32>
    %cst = arith.constant dense<0xFF800000> : vector<8xf32>
    %5 = vector.multi_reduction <maximumf>, %3, %cst [1] : vector<8x32xf32> to vector<8xf32>
    %6 = vector.shape_cast %5 : vector<8xf32> to vector<8x1xf32>
    %7 = vector.broadcast %6 : vector<8x1xf32> to vector<8x32xf32>
    %8 = arith.subf %3, %7 : vector<8x32xf32>
    %9 = math.exp %8 : vector<8x32xf32>
    %cst_4 = arith.constant dense<0.000000e+00> : vector<8xf32>
    %10 = vector.multi_reduction <add>, %9, %cst_4 [1] : vector<8x32xf32> to vector<8xf32>
    %11 = vector.shape_cast %10 : vector<8xf32> to vector<8x1xf32>
    %12 = tpu.iota {dimensions = array<i32: 1>} : vector<8x32xi32>
    %13 = vector.broadcast %4 : vector<8x1xi32> to vector<8x32xi32>
    %14 = arith.cmpi eq, %12, %13 : vector<8x32xi32>
    %cst_5 = arith.constant 0.000000e+00 : f32
    %15 = vector.broadcast %cst_5 : f32 to vector<8x32xf32>
    %16 = arith.select %14, %3, %15 : vector<8x32xi1>, vector<8x32xf32>
    %cst_6 = arith.constant dense<0.000000e+00> : vector<8xf32>
    %17 = vector.multi_reduction <add>, %16, %cst_6 [1] : vector<8x32xf32> to vector<8xf32>
    %18 = vector.shape_cast %17 : vector<8xf32> to vector<8x1xf32>
    %cst_7 = arith.constant 0.000000e+00 : f32
    %19 = vector.broadcast %cst_7 : f32 to vector<8x32xf32>
    %20 = arith.select %14, %9, %19 : vector<8x32xi1>, vector<8x32xf32>
    %cst_8 = arith.constant dense<0.000000e+00> : vector<8xf32>
    %21 = vector.multi_reduction <add>, %20, %cst_8 [1] : vector<8x32xf32> to vector<8xf32>
    %22 = vector.shape_cast %21 : vector<8xf32> to vector<8x1xf32>
    %23 = math.log %11 : vector<8x1xf32>
    %24 = arith.addf %6, %23 : vector<8x1xf32>
    %25 = arith.subf %24, %18 : vector<8x1xf32>
    %26 = tpu.reciprocal %11 : vector<8x1xf32> -> vector<8x1xf32>
    %27 = arith.mulf %22, %26 : vector<8x1xf32>
    %cst_9 = arith.constant 1.000000e+00 : f32
    %28 = vector.broadcast %cst_9 : f32 to vector<8x1xf32>
    %29 = arith.subf %28, %27 : vector<8x1xf32>
    %cst_10 = arith.constant 1.000000e+00 : f32
    %30 = vector.broadcast %cst_10 : f32 to vector<8x1xf32>
    %31 = arith.mulf %30, %29 : vector<8x1xf32>
    %32 = arith.mulf %31, %29 : vector<8x1xf32>
    %33 = arith.mulf %32, %25 : vector<8x1xf32>
    %34 = tpu.iota {dimensions = array<i32: 0>} : vector<8x1xi32>
    %c8_i32 = arith.constant 8 : i32
    %35 = arith.muli %arg0, %c8_i32 : i32
    %36 = vector.broadcast %35 : i32 to vector<8x1xi32>
    %37 = arith.addi %34, %36 : vector<8x1xi32>
    %c8_i32_11 = arith.constant 8 : i32
    %38 = vector.broadcast %c8_i32_11 : i32 to vector<8x1xi32>
    %39 = arith.cmpi slt, %37, %38 : vector<8x1xi32>
    %cst_12 = arith.constant 0.000000e+00 : f32
    %40 = vector.broadcast %cst_12 : f32 to vector<8x1xf32>
    %41 = arith.select %39, %33, %40 : vector<8x1xi1>, vector<8x1xf32>
    %c0_13 = arith.constant 0 : index
    %c0_14 = arith.constant 0 : index
    %42 = vector.load %arg4[%c0_13, %c0_14] : memref<1x1xf32, #tpu.memory_space<vmem>>, vector<1x1xf32>
    %cst_15 = arith.constant dense<0.000000e+00> : vector<1xf32>
    %43 = vector.multi_reduction <add>, %41, %cst_15 [0] : vector<8x1xf32> to vector<1xf32>
    %44 = vector.shape_cast %43 : vector<1xf32> to vector<1x1xf32>
    %45 = arith.addf %42, %44 : vector<1x1xf32>
    %c0_16 = arith.constant 0 : index
    %c0_17 = arith.constant 0 : index
    %46 = vector.load %arg4[%c0_16, %c0_17] : memref<1x1xf32, #tpu.memory_space<vmem>>, vector<1x1xf32>
    tpu.vector_store %arg4[%c0_16, %c0_17], %45 {strides = array<i32>} : memref<1x1xf32, #tpu.memory_space<vmem>>, vector<1x1xf32>,
    %c0_i32_18 = arith.constant 0 : i32
    %47 = arith.cmpi eq, %arg0, %c0_i32_18 : i32
    %48 = arith.extui %47 : i1 to i32
    %c0_i32_19 = arith.constant 0 : i32
    %49 = arith.cmpi ne, %48, %c0_i32_19 : i32
    scf.if %49 {
      %c0_20 = arith.constant 0 : index
      %c0_21 = arith.constant 0 : index
      %50 = vector.load %arg4[%c0_20, %c0_21] : memref<1x1xf32, #tpu.memory_space<vmem>>, vector<1x1xf32>
      %cst_22 = arith.constant 1.250000e-01 : f32
      %51 = vector.broadcast %cst_22 : f32 to vector<1x1xf32>
      %52 = arith.mulf %50, %51 : vector<1x1xf32>
      %c0_23 = arith.constant 0 : index
      %c0_24 = arith.constant 0 : index
      %53 = vector.load %arg3[%c0_23, %c0_24] : memref<1x1xf32, #tpu.memory_space<vmem>>, vector<1x1xf32>
      tpu.vector_store %arg3[%c0_23, %c0_24], %52 {strides = array<i32>} : memref<1x1xf32, #tpu.memory_space<vmem>>, vector<1x1xf32>,
    } else {
    }
    return
  }
  func.func @transform_0(%arg0: i32) -> (i32, i32) {
    %c0_i32 = arith.constant 0 : i32
    %c0_i32_0 = arith.constant 0 : i32
    return %arg0, %c0_i32 : i32, i32
  }
  func.func @transform_1(%arg0: i32) -> (i32, i32) {
    %c0_i32 = arith.constant 0 : i32
    %c0_i32_0 = arith.constant 0 : i32
    return %arg0, %c0_i32 : i32, i32
  }
  func.func @transform_2(%arg0: i32) -> (i32, i32) {
    %c0_i32 = arith.constant 0 : i32
    %c0_i32_0 = arith.constant 0 : i32
    %c0_i32_1 = arith.constant 0 : i32
    return %c0_i32, %c0_i32_0 : i32, i32
  }
}

</mosaic_0001>

<bundles_post_ra>
// kernel: tpu_custom_call.1
= control target key start
LH: loop header
LB: loop body
LE: loop exit
PB: predicated region body
PF: predicated region fallthrough
CT: control target
= control target key end

     0   :  { %vm20_vm0 = vcmask 261120   ;;  %s156_s0 = inlined_call_operand.vmem [shape: f32[8,32], index: 0, kind: input, shape index: {}]   ;;  %s157_s1 = inlined_call_operand.vmem [shape: s32[8,1], index: 1, kind: input, shape index: {}]   ;;  %s158_s2 = inlined_call_operand.hbm [shape: f32[1,1], index: 2, kind: output, shape index: {}]  }
   0x1   :  { %v18_v0 = vld [vmem:[%s156_s0] sm:$0xff] }
   0x2   :  { %7 = vsyncpa [#allocation4], 0  ;;  %v21_v1 = vsel %vm20_vm0, %v18_v0, -inf  ;;  %v122_v2 = vmov 0   ;;  %v19_v3 = vld [vmem:[%s157_s1] sm:$0xff]  ;;  %v30_v7 = vlaneseq  ;;  %vm16_vm2 = vcmask 0  }
   0x3   :  { %93 = vset.pattern.permute.xlu0 %v122_v2  ;;  %v123_v16 = vmov 0.0   ;;  %s124_s0 = smov [#allocation3]  }
   0x4   :  { %22 = vmax.xlane.f32.xlu0 %v21_v1  ;;  %v31_v8 = vand.u32 127, %v30_v7  ;;  %17 = vst.msk [vmem:[#allocation2] sm:$0x1] %vm16_vm2, %v123_v16  ;;  %s82_s1 = sshll.u32 %s124_s0, 4  ;;  %s83_s1 = int_to_ptr.vmem [resolvable:$true] %s82_s1 }
   0x5   :  { %s100_s13 = scalar_lea.vmem %s83_s1, 16  ;;  %s104_s14 = scalar_lea.vmem %s83_s1, 32 }
   0x6   :  { %p101_p0 = scmp.ne.s32.totalorder %s83_s1, %s100_s13  ;;  %p105_p1 = scmp.lt.s32.totalorder %s83_s1, %s83_s1 }
   0x7   :  { %p106_p2 = scmp.lt.s32.totalorder %s104_s14, %s100_s13 }
   0x9   :  { %p107_p3 = por %p106_p2, %p105_p1 }
   0xb   :  { %v60_v34 = vld [vmem:[#allocation2] sm:$0x1]  ;;  %p108_p4 = pnand %p107_p3, %p101_p0 }
  0x1a   :  { %33 = vperm.xlu0 %93, %v19_v3  }
  0x8d   :  { %v23_v4 = vpop.xlane.xlu0 %22 }
  0x8e   :  { %v24_v5 = vsub.f32 %v18_v0, %v23_v4 }
  0x90   :  { %v25_v6 = vmul.f32 1.442695, %v24_v5 }
  0x92   :  { %94 = vpow2.f32 %v25_v6 }
  0x95   :  { %v34_v9 = vpop.permute.xlu0 %33 }
  0x96   :  { %vm35_vm1 = vcmp.eq.s32.totalorder %v31_v8, %v34_v9 }
  0x97   :  { %v36_v13 = vsel %vm35_vm1, %v18_v0, 0.0 }
  0x98   :  { %v37_v15 = vsel %vm20_vm0, %v36_v13, 0.0 }
  0x9f   :  { %v95_v10 = vpop.eup %94 }
  0xa0   :  { %v27_v11 = vsel %vm20_vm0, %v95_v10, 0.0  ;;  %v40_v12 = vsel %vm35_vm1, %v95_v10, 0.0 }
  0xa1   :  { %28 = vadd.xlane.f32.xlu1 %v27_v11  ;;  %v41_v14 = vsel %vm20_vm0, %v40_v12, 0.0 }
  0xa5   :  { %42 = vadd.xlane.f32.xlu1 %v41_v14 }
  0xa9   :  { %38 = vadd.xlane.f32.xlu1 %v37_v15 }
 0x12a   :  { %v29_v17 = vpop.xlane.xlu1 %28 }
 0x12b   :  { %96 = vlog2.f32 %v29_v17 }
 0x12c   :  { %98 = vrcp.f32 %v29_v17 }
 0x12e   :  { %v43_v19 = vpop.xlane.xlu1 %42 }
 0x132   :  { %v39_v25 = vpop.xlane.xlu1 %38 }
 0x138   :  { %v97_v18 = vpop.eup %96 }
 0x139   :  { %v99_v20 = vpop.eup %98  ;;  %v45_v21 = vmul.f32 0.6931472, %v97_v18 }
 0x13a   :  { %v49_v22 = vmul.f32 %v99_v20, %v43_v19 }
 0x13b   :  { %v46_v23 = vadd.f32 %v45_v21, %v23_v4 }
 0x13c   :  { %v50_v24 = vsub.f32 1.0, %v49_v22 }
 0x13d   :  { %v47_v26 = vsub.f32 %v46_v23, %v39_v25 }
 0x13e   :  { %v51_v27 = vmul.f32 %v50_v24, %v50_v24 }
 0x140   :  { %v52_v28 = vmul.f32 %v51_v27, %v47_v26 }
 0x142   :  { %v61_v29 = vrot.slane %v52_v28, 4 }
 0x144   :  { %v62_v30 = vadd.f32 %v61_v29, %v52_v28 }
 0x146   :  { %v63_v31 = vrot.slane %v62_v30, 2 }
 0x148   :  { %v64_v32 = vadd.f32 %v63_v31, %v62_v30 }
 0x14a   :  { %v65_v33 = vrot.slane %v64_v32, 1 }
 0x14c   :  { %v66_v35 = vadd.f32 %v65_v33, %v64_v32 }
 0x14e   :  { %v67_v36 = vadd.f32 %v66_v35, %v60_v34 }
 0x150   :  { %69 = vst.msk [vmem:[#allocation2] sm:$0x1] %vm16_vm2, %v67_v36 }
 0x157   :  { %v73_v37 = vld [vmem:[#allocation2] sm:$0x1] }
 0x158   :  { %v74_v38 = vmul.f32 0.125, %v73_v37 }
 0x15a   :  { %75 = vst.msk [vmem:[#allocation3] sm:$0x1] %vm16_vm2, %v74_v38 }
 0x15b   :  { %111 = shalt.err (!%p108_p4)
}
 0x15c   :  { %85 = dma.vmem_to_hbm [thread:$0]  %s83_s1, 16, %s158_s2, [#allocation4]  }
 0x15d   :  { %120 = dma.done.wait [#allocation4], 16  }
 0x15e   :  { %121 = vsyncadd [#allocation4], 4294967280 }
 0x15f   :  { %89 = vsyncpa [#allocation4], 1 }

</bundles_post_ra>
